<compile_context>
chip_gen: v7x
topology: tpu7x:2x2x1
jax: 0.10.0
libtpu: 0.0.40
codegen_flags: <defaults>
</compile_context>

<pallas_src>
import functools

import jax
import jax.numpy as jnp
import numpy as np
from jax.experimental import pallas as pl
from jax.experimental.pallas import tpu as pltpu


def _round_up(x, m):
    return ((x + m - 1) // m) * m


def _vmem_budgets():
    """(per-block working-set budget, scoped vmem limit) sized for this chip gen."""
    cap = 64 * 1024 * 1024                       # conservative default (v7x-sized)
    try:
        info = pltpu.get_tpu_info()
        cap = int(getattr(info, "vmem_capacity_bytes", 0) or cap)
    except Exception:
        pass
    tile_budget = cap // 4                       # 32 MiB on 128 MiB parts, 16 MiB on v7x
    vmem_limit = min(cap * 3 // 4, cap - (8 << 20))
    return tile_budget, int(vmem_limit)


def _inv_pow(base, beta):
    """base ** (-beta) with cheap EUP specializations for the common betas."""
    if beta == 0.0:
        return jnp.ones_like(base)
    if beta == 0.5:
        return jax.lax.rsqrt(base)
    if beta == 0.75:
        # base**-0.75 == rsqrt(base * sqrt(base)); 2 cheap EUP ops instead of log+exp.
        return jax.lax.rsqrt(base * jnp.sqrt(base))
    if beta == 1.0:
        return pl.reciprocal(base, approx=False)
    return jnp.exp(-beta * jnp.log(base))


# ---------------------------------------------------------------------------
# Kernels
# ---------------------------------------------------------------------------
def _lrn_across_kernel(x_ref, o_ref, *scratch, local_size, alpha, beta):
    """x_ref/o_ref: (nb, C, lt).  Optional scratch (nb, Cp, lt) f32, only if C % 8 != 0."""
    nb, C, lt = x_ref.shape
    pad = (local_size - 1) // 2
    xf = x_ref[...].astype(jnp.float32)
    sq = xf * xf

    if pad == 0:
        acc = sq
    elif not scratch:
        # Scratch-free path (C % 8 == 0): windowed channel sum via in-register
        # sublane rotations with the wrapped rows masked to zero.  No per-step
        # VMEM slab store/reload.
        ci = jax.lax.broadcasted_iota(jnp.int32, sq.shape, 1)
        acc = sq
        for d in range(1, pad + 1):
            if d >= C:          # window reaches past every channel; zeros only
                break
            dn = pltpu.roll(sq, d, 1)         # row c <- row c-d (wraps for c < d)
            up = pltpu.roll(sq, C - d, 1)     # row c <- row c+d (wraps for c >= C-d)
            acc = acc + jnp.where(ci >= d, dn, 0.0) + jnp.where(ci < C - d, up, 0.0)
    else:
        # Fallback for sublane-unaligned C: zero-padded VMEM slab (Cp multiple of 8)
        # so every rotation stays aligned.  Only the pad rows are (re)zeroed.
        pad_ref, = scratch
        Cp = pad_ref.shape[1]
        pad_ref[:, pl.ds(C, Cp - C), :] = jnp.zeros((nb, Cp - C, lt), jnp.float32)
        pad_ref[:, pl.ds(0, C), :] = sq
        q = pad_ref[...]
        acc_p = q
        for d in range(1, pad + 1):
            acc_p = acc_p + pltpu.roll(q, d, 1) + pltpu.roll(q, Cp - d, 1)
        acc = acc_p[:, 0:C, :]

    base = acc * (alpha / local_size) + 1.0     # AvgPool3d: /local_size (count_include_pad)
    o_ref[...] = (xf * _inv_pow(base, beta)).astype(o_ref.dtype)


def _lrn_within_flat_kernel(x_ref, o_ref, *, H, W, local_size, alpha, beta):
    """x_ref/o_ref: (ct, L), L = H*W row-major, W a power of two.

    Separable 2-D window sum done entirely in registers with lane rotations: the
    H pass shifts by +/-d*W, the W pass by +/-d; out-of-image wrap positions are
    masked with iota compares (w = hw & (W-1)).  Lane-dense loads and stores.
    """
    ct, L = x_ref.shape
    pad = (local_size - 1) // 2
    xf = x_ref[...].astype(jnp.float32)
    sq = xf * xf

    if pad == 0:
        acc = sq
    else:
        hw = jax.lax.broadcasted_iota(jnp.int32, sq.shape, 1)
        w = jnp.bitwise_and(hw, W - 1)
        th = sq                                   # H (row) pass
        for d in range(1, pad + 1):
            if d * W >= L:                        # d >= H: only padded zeros left
                break
            s = d * W
            dn = pltpu.roll(sq, s, 1)             # (h, w) <- (h - d, w)
            up = pltpu.roll(sq, L - s, 1)         # (h, w) <- (h + d, w)
            th = th + jnp.where(hw >= s, dn, 0.0) + jnp.where(hw < L - s, up, 0.0)
        acc = th                                  # W (column) pass
        for d in range(1, pad + 1):
            if d >= W:
                break
            lt_ = pltpu.roll(th, d, 1)            # (h, w) <- (h, w - d)
            rt_ = pltpu.roll(th, L - d, 1)        # (h, w) <- (h, w + d)
            acc = acc + jnp.where(w >= d, lt_, 0.0) + jnp.where(w < W - d, rt_, 0.0)

    base = acc * (alpha / (local_size * local_size)) + 1.0   # AvgPool2d: /k^2
    o_ref[...] = (xf * _inv_pow(base, beta)).astype(o_ref.dtype)


def _strips(n, npad, pad):
    """Intervals [a, b) inside [n, npad) that +/-d (d <= pad) rotations can wrap through."""
    out = []
    a0, a1 = n, min(n + pad, npad)
    if a1 > a0:
        out.append((a0, a1))
    b0, b1 = max(npad - pad, a1), npad
    if b1 > b0:
        out.append((b0, b1))
    return out


def _lrn_within_kernel(x_ref, o_ref, pad_ref, *, local_size, alpha, beta):
    """x_ref/o_ref: (ct, H, W).  pad_ref: (ct, Hp, Wp) f32 zero-padded slab.

    Fallback for spatial shapes the flat lane-rotation kernel doesn't take
    (non power-of-two W).  Only the pad strips reachable by the rotations are
    (re)zeroed each step, not the whole slab.
    """
    ct, H, W = x_ref.shape
    _, Hp, Wp = pad_ref.shape
    pad = (local_size - 1) // 2
    xf = x_ref[...].astype(jnp.float32)
    sq = xf * xf

    if pad == 0:
        acc = sq
    else:
        for r0, r1 in _strips(H, Hp, pad):
            pad_ref[:, pl.ds(r0, r1 - r0), :] = jnp.zeros((ct, r1 - r0, Wp), jnp.float32)
        for c0, c1 in _strips(W, Wp, pad):
            pad_ref[:, :, pl.ds(c0, c1 - c0)] = jnp.zeros((ct, Hp, c1 - c0), jnp.float32)
        pad_ref[:, pl.ds(0, H), pl.ds(0, W)] = sq
        q = pad_ref[...]
        th = q
        for d in range(1, pad + 1):
            th = th + pltpu.roll(q, d, 1) + pltpu.roll(q, Hp - d, 1)
        acc_p = th
        for d in range(1, pad + 1):
            acc_p = acc_p + pltpu.roll(th, d, 2) + pltpu.roll(th, Wp - d, 2)
        acc = acc_p[:, 0:H, 0:W]

    base = acc * (alpha / (local_size * local_size)) + 1.0
    o_ref[...] = (xf * _inv_pow(base, beta)).astype(o_ref.dtype)


# ---------------------------------------------------------------------------
# Tiling pickers
# ---------------------------------------------------------------------------
def _pick_across_tiles(N, C, L, pad, budget):
    """(samples per block, lane tile) for the across-channel path."""
    rows = _round_up(C + pad, 8)
    per_lane = rows * 4 * 10          # ~10 live f32 copies of one (rows, 1) column
    lt = max(128, (budget // per_lane) // 128 * 128)
    lt = min(lt, 32768)
    if L > lt:
        return 1, lt                  # many lane tiles -> plenty of grid steps already
    # One lane tile covers the whole image: batch samples per block, but keep the
    # grid at >= 2 steps where possible (v7x has 2 TensorCores; <1 extra us elsewhere).
    if N == 1:
        if L >= 256:
            return 1, max(128, (L // 2) // 128 * 128)
        return 1, L
    nb = max(1, budget // (per_lane * L))
    nb = min(nb, N, -(-N // 2))
    while N % nb:                     # keep blocks non-ragged along the sample axis
        nb -= 1
    return nb, L


def _pick_within_ct(NC, L, budget):
    """Rows (n*c images) per block for the flattened within-channel path."""
    per_row = L * 4 * 10
    ct = max(8, (budget // per_row) // 8 * 8)     # multiple of 8 (sublane block rule)
    if ct >= NC:
        return NC
    if NC >= 16:
        ct = min(ct, _round_up(-(-NC // 2), 8))   # >= 2 grid steps for megacore parts
    return ct


def _pick_within_fallback_ct(NC, hw_bytes, pad_bytes, budget):
    per_ch = 4 * hw_bytes + 8 * pad_bytes
    ct = max(1, budget // per_ch)
    ct = min(ct, NC)
    if NC >= 2:
        # Keeping >=2 steps costs at most one sub-us step on 1-TC parts but can be
        # worth 2x on v7x; only bites when everything would otherwise fit one block.
        ct = min(ct, -(-NC // 2))
    return int(ct)


# ---------------------------------------------------------------------------
# Wrapper
# ---------------------------------------------------------------------------
def lrn_forward(x, local_size=1, alpha=1.0, beta=0.75, across_channels=True):
    """x: (N, C, H, W) float32 -> (N, C, H, W).  Matches LRN.forward."""
    assert local_size % 2 == 1, "LRN only well-defined here for odd local_size"
    N, C, H, W = x.shape
    pad = (local_size - 1) // 2
    tile_budget, vmem_limit = _vmem_budgets()
    cparams = lambda sems: pltpu.CompilerParams(
        dimension_semantics=sems, vmem_limit_bytes=vmem_limit)

    if across_channels:
        L = H * W
        nb, lt = _pick_across_tiles(N, C, L, pad, tile_budget)
        xf = x.reshape(N, C, L)
        scratch = []
        if pad > 0 and C % 8 != 0:
            Cp = _round_up(C + pad, 8)
            assert Cp >= C + pad
            scratch = [pltpu.VMEM((nb, Cp, lt), jnp.float32)]
        kernel = functools.partial(
            _lrn_across_kernel, local_size=local_size, alpha=alpha, beta=beta)
        out = pl.pallas_call(
            kernel,
            out_shape=jax.ShapeDtypeStruct((N, C, L), x.dtype),
            grid=(pl.cdiv(N, nb), pl.cdiv(L, lt)),
            in_specs=[pl.BlockSpec((nb, C, lt), lambda b, t: (b, 0, t))],
            out_specs=pl.BlockSpec((nb, C, lt), lambda b, t: (b, 0, t)),
            scratch_shapes=scratch,
            compiler_params=cparams(("parallel", "parallel")),
        )(xf)
        return out.reshape(N, C, H, W)

    # ---- within-channel (ACROSS_CHANNELS=False) ----
    NC, L = N * C, H * W
    if pad == 0 or (L % 128 == 0 and (W & (W - 1)) == 0):
        # Lane-dense flattened layout; scratch-free masked lane rotations.
        ct = _pick_within_ct(NC, L, tile_budget)
        xr = x.reshape(NC, L)
        kernel = functools.partial(
            _lrn_within_flat_kernel, H=H, W=W,
            local_size=local_size, alpha=alpha, beta=beta)
        out = pl.pallas_call(
            kernel,
            out_shape=jax.ShapeDtypeStruct((NC, L), x.dtype),
            grid=(pl.cdiv(NC, ct),),
            in_specs=[pl.BlockSpec((ct, L), lambda i: (i, 0))],
            out_specs=pl.BlockSpec((ct, L), lambda i: (i, 0)),
            compiler_params=cparams(("parallel",)),
        )(xr)
        return out.reshape(N, C, H, W)

    # Fallback: aligned zero-padded slab (only the pad strips are zeroed per step).
    # TODO(synk): a channels-last layout would make these stores lane-dense for
    # large C; not worth the wrapper transposes for the shapes exercised here.
    Hp = _round_up(H + pad, 8)
    Wp = _round_up(W + pad, 128)
    assert Hp >= H + pad and Wp >= W + pad
    ct = _pick_within_fallback_ct(NC, H * W * 4, Hp * Wp * 4, tile_budget)
    xr = x.reshape(NC, H, W)
    kernel = functools.partial(
        _lrn_within_kernel, local_size=local_size, alpha=alpha, beta=beta)
    out = pl.pallas_call(
        kernel,
        out_shape=jax.ShapeDtypeStruct((NC, H, W), x.dtype),
        grid=(pl.cdiv(NC, ct),),
        in_specs=[pl.BlockSpec((ct, H, W), lambda i: (i, 0, 0))],
        out_specs=pl.BlockSpec((ct, H, W), lambda i: (i, 0, 0)),
        scratch_shapes=[pltpu.VMEM((ct, Hp, Wp), jnp.float32)],
        compiler_params=cparams(("parallel",)),
    )(xr)
    return out.reshape(N, C, H, W)


# ---------------------------------------------------------------------------
# Pure-JAX references (for correctness checking only)
# ---------------------------------------------------------------------------
def _ref_across(x, k, alpha, beta):
    pad = (k - 1) // 2
    C = x.shape[1]
    sq = jnp.pad(x * x, ((0, 0), (pad, pad), (0, 0), (0, 0)))
    acc = sum(sq[:, d:d + C] for d in range(k)) / k
    return x / ((acc * alpha + 1.0) ** beta)


def _ref_within(x, k, alpha, beta):
    pad = (k - 1) // 2
    H, W = x.shape[2], x.shape[3]
    sq = jnp.pad(x * x, ((0, 0), (0, 0), (pad, pad), (pad, pad)))
    acc = sum(sq[:, :, i:i + H, j:j + W] for i in range(k) for j in range(k)) / (k * k)
    return x / ((acc * alpha + 1.0) ** beta)


if __name__ == "__main__":
    key = jax.random.PRNGKey(0)
    x = jax.random.normal(key, (2, 4, 16, 16), dtype=jnp.float32)

    # ACROSS_CHANNELS=True, window 5, C=4 (sublane-unaligned -> scratch fallback path).
    out_ac = lrn_forward(x, local_size=5, alpha=1.0, beta=0.75, across_channels=True)
    jax.block_until_ready(out_ac)
    ref_ac = _ref_across(x, 5, 1.0, 0.75)
    np.testing.assert_allclose(np.asarray(out_ac), np.asarray(ref_ac), rtol=1e-5, atol=1e-5)

    # Sublane-aligned channel count (C=16) exercises the scratch-free in-register path.
    x16 = jax.random.normal(jax.random.PRNGKey(2), (2, 16, 16, 16), dtype=jnp.float32)
    out_ac16 = lrn_forward(x16, local_size=5, alpha=2.0, beta=0.75, across_channels=True)
    jax.block_until_ready(out_ac16)
    ref_ac16 = _ref_across(x16, 5, 2.0, 0.75)
    np.testing.assert_allclose(np.asarray(out_ac16), np.asarray(ref_ac16), rtol=1e-5, atol=1e-5)

    # Module defaults: local_size=1, ACROSS_CHANNELS=True (per-element).
    out_d = lrn_forward(x)
    jax.block_until_ready(out_d)
    ref_d = x / ((x * x + 1.0) ** 0.75)
    np.testing.assert_allclose(np.asarray(out_d), np.asarray(ref_d), rtol=1e-5, atol=1e-5)

    # ACROSS_CHANNELS=False, W=16 power of two, H*W=256 -> lane-dense flattened path.
    out_wc = lrn_forward(x, local_size=3, alpha=1.0, beta=0.75, across_channels=False)
    jax.block_until_ready(out_wc)
    ref_wc = _ref_within(x, 3, 1.0, 0.75)
    np.testing.assert_allclose(np.asarray(out_wc), np.asarray(ref_wc), rtol=1e-5, atol=1e-5)

    # ACROSS_CHANNELS=False, non-power-of-two width -> padded-slab fallback path.
    x2 = jax.random.normal(jax.random.PRNGKey(1), (2, 4, 12, 12), dtype=jnp.float32)
    out_wc2 = lrn_forward(x2, local_size=3, alpha=1.0, beta=0.75, across_channels=False)
    jax.block_until_ready(out_wc2)
    ref_wc2 = _ref_within(x2, 3, 1.0, 0.75)
    np.testing.assert_allclose(np.asarray(out_wc2), np.asarray(ref_wc2), rtol=1e-5, atol=1e-5)

    print("KERNEL_OK")
</pallas_src>

<mosaic_0001>
module attributes {stable_mosaic.version = 11 : i64} {
  func.func @_lrn_across_kernel(%arg0: i32, %arg1: i32, %arg2: memref<1x4x256xf32, #tpu.memory_space<vmem>>, %arg3: memref<1x4x256xf32, #tpu.memory_space<vmem>>, %arg4: memref<1x8x256xf32, #tpu.memory_space<vmem>>) attributes {dimension_semantics = [#tpu.dimension_semantics<parallel>, #tpu.dimension_semantics<parallel>], iteration_bounds = array<i64: 2, 1>, scalar_prefetch = 0 : i64, scratch_operands = 1 : i64, tpu.core_type = #tpu.core_type<tc>, window_params = [{transform_indices = @transform_0, window_bounds = array<i64: 1, 4, 256>}, {transform_indices = @transform_1, window_bounds = array<i64: 1, 4, 256>}]} {
    %c0 = arith.constant 0 : index
    %c0_0 = arith.constant 0 : index
    %c0_1 = arith.constant 0 : index
    %0 = vector.load %arg2[%c0, %c0_0, %c0_1] : memref<1x4x256xf32, #tpu.memory_space<vmem>>, vector<1x4x256xf32>
    %1 = arith.mulf %0, %0 : vector<1x4x256xf32>
    %cst = arith.constant 0.000000e+00 : f32
    %2 = vector.broadcast %cst : f32 to vector<1x4x256xf32>
    %c0_2 = arith.constant 0 : index
    %c4 = arith.constant 4 : index
    %c0_3 = arith.constant 0 : index
    %3 = vector.load %arg4[%c0_2, %c4, %c0_3] : memref<1x8x256xf32, #tpu.memory_space<vmem>>, vector<1x4x256xf32>
    tpu.vector_store %arg4[%c0_2, %c4, %c0_3], %2 {strides = array<i32>} : memref<1x8x256xf32, #tpu.memory_space<vmem>>, vector<1x4x256xf32>,
    %c0_4 = arith.constant 0 : index
    %c0_5 = arith.constant 0 : index
    %c0_6 = arith.constant 0 : index
    %4 = vector.load %arg4[%c0_4, %c0_5, %c0_6] : memref<1x8x256xf32, #tpu.memory_space<vmem>>, vector<1x4x256xf32>
    tpu.vector_store %arg4[%c0_4, %c0_5, %c0_6], %1 {strides = array<i32>} : memref<1x8x256xf32, #tpu.memory_space<vmem>>, vector<1x4x256xf32>,
    %c0_7 = arith.constant 0 : index
    %c0_8 = arith.constant 0 : index
    %c0_9 = arith.constant 0 : index
    %5 = vector.load %arg4[%c0_7, %c0_8, %c0_9] : memref<1x8x256xf32, #tpu.memory_space<vmem>>, vector<1x8x256xf32>
    %c1_i32 = arith.constant 1 : i32
    %6 = tpu.dynamic_rotate %5 by %c1_i32 dim 1 : vector<1x8x256xf32>, i32 -> vector<1x8x256xf32>
    %7 = arith.addf %5, %6 : vector<1x8x256xf32>
    %c7_i32 = arith.constant 7 : i32
    %8 = tpu.dynamic_rotate %5 by %c7_i32 dim 1 : vector<1x8x256xf32>, i32 -> vector<1x8x256xf32>
    %9 = arith.addf %7, %8 : vector<1x8x256xf32>
    %c2_i32 = arith.constant 2 : i32
    %10 = tpu.dynamic_rotate %5 by %c2_i32 dim 1 : vector<1x8x256xf32>, i32 -> vector<1x8x256xf32>
    %11 = arith.addf %9, %10 : vector<1x8x256xf32>
    %c6_i32 = arith.constant 6 : i32
    %12 = tpu.dynamic_rotate %5 by %c6_i32 dim 1 : vector<1x8x256xf32>, i32 -> vector<1x8x256xf32>
    %13 = arith.addf %11, %12 : vector<1x8x256xf32>
    %14 = vector.extract_strided_slice %13 {offsets = [0, 0, 0], sizes = [1, 4, 256], strides = [1, 1, 1]} : vector<1x8x256xf32> to vector<1x4x256xf32>
    %cst_10 = arith.constant 2.000000e-01 : f32
    %15 = vector.broadcast %cst_10 : f32 to vector<1x4x256xf32>
    %16 = arith.mulf %14, %15 : vector<1x4x256xf32>
    %cst_11 = arith.constant 1.000000e+00 : f32
    %17 = vector.broadcast %cst_11 : f32 to vector<1x4x256xf32>
    %18 = arith.addf %16, %17 : vector<1x4x256xf32>
    %19 = math.sqrt %18 : vector<1x4x256xf32>
    %20 = arith.mulf %18, %19 : vector<1x4x256xf32>
    %21 = math.rsqrt %20 : vector<1x4x256xf32>
    %22 = arith.mulf %0, %21 : vector<1x4x256xf32>
    %c0_12 = arith.constant 0 : index
    %c0_13 = arith.constant 0 : index
    %c0_14 = arith.constant 0 : index
    %23 = vector.load %arg3[%c0_12, %c0_13, %c0_14] : memref<1x4x256xf32, #tpu.memory_space<vmem>>, vector<1x4x256xf32>
    tpu.vector_store %arg3[%c0_12, %c0_13, %c0_14], %22 {strides = array<i32>} : memref<1x4x256xf32, #tpu.memory_space<vmem>>, vector<1x4x256xf32>,
    return
  }
  func.func @transform_0(%arg0: i32, %arg1: i32) -> (i32, i32, i32) {
    %c0_i32 = arith.constant 0 : i32
    %c0_i32_0 = arith.constant 0 : i32
    return %arg0, %c0_i32, %arg1 : i32, i32, i32
  }
  func.func @transform_1(%arg0: i32, %arg1: i32) -> (i32, i32, i32) {
    %c0_i32 = arith.constant 0 : i32
    %c0_i32_0 = arith.constant 0 : i32
    return %arg0, %c0_i32, %arg1 : i32, i32, i32
  }
}

</mosaic_0001>

<bundles_post_ra>
// kernel: tpu_custom_call.1
= control target key start
LH: loop header
LB: loop body
LE: loop exit
PB: predicated region body
PF: predicated region fallthrough
CT: control target
= control target key end

     0   :  { %6 = vsyncpa [#allocation4], 0  ;;  %s700_s0 = inlined_call_operand.hbm [shape: f32[2,4,256], index: 0, kind: input, shape index: {}]   ;;  %s701_s1 = inlined_call_operand.hbm [shape: f32[2,4,256], index: 1, kind: output, shape index: {}]  }
   0x1   :  { %8 = vsyncpa [#allocation4 + $0x1], 0 }
   0x2   :  { %9 = vsyncpa [#allocation5], 0 }
   0x3   :  { %11 = vsyncpa [#allocation5 + $0x1], 0  ;;  %s524_s6 = smov 0   ;;  %s526_s7 = smov 0  }
   0x4   :  { %s528_s8 = smov 0   ;;  %s530_s9 = smov 0  }
   0x5   :  { %s532_s10 = smov 0   ;;  %s534_s11 = smov 0  }
   0x6 LB: > { %s309_s12 = sadd.s32 4294967295, %s509_s11   ;;  %s310_s13 = sadd.s32 4294967294, %s509_s11   ;;  %s509_s11 = sphi %s534_s11, %s17_s11   ;;  %s505_s10 = sphi %s532_s10, %s717_s10   ;;  %s501_s9 = sphi %s530_s9, %s716_s9   ;;  %s497_s8 = sphi %s528_s8, %s715_s8   ;;  %s493_s7 = sphi %s526_s7, %s714_s7   ;;  %s489_s6 = sphi %s524_s6, %s713_s6  }
   0x7   : > { %s29_s14 = sadd.s32 1, %s505_s10  ;;  %s38_s15 = sadd.s32 1, %s497_s8 }
   0x8   : > { %p31_p0 = scmp.ge.s32.totalorder %s29_s14, 2  ;;  %p45_p1 = scmp.ne.s32.totalorder %s497_s8, %s493_s7 }
   0x9   : > { %p46_p2 = scmp.eq.s32.totalorder %s509_s11, 0  ;;  %p51_p3 = scmp.ne.s32.totalorder %s493_s7, %s489_s6 }
   0xa   : > { %s719_s14 = smov (%p31_p0, %s29_s14), 0  ;;  %p52_p5 = scmp.eq.s32.totalorder %s309_s12, 0 }
   0xb   : > { %p565_p4 = por %p46_p2, %p45_p1  ;;  %s33_s17 = ssub.s32 %s505_s10, %s719_s14 }
   0xc   : > { %p77_p6 = scmp.eq.s32.totalorder %s309_s12, 1  ;;  %p36_p7 = scmp.eq.s32.totalorder %s33_s17, 0 }
   0xd   : > { %p571_p8 = por %p52_p5, %p51_p3  ;;  %p83_p10 = scmp.eq.s32.totalorder %s310_s13, 1 }
   0xe   : > { %p575_p9 = por %p77_p6, %p45_p1  ;;  %p338_p13 = scmp.lt.s32.totalorder %s509_s11, 2 }
   0xf   : > { %s580_s20 = scalar_select %p36_p7, %s497_s8, %s38_s15  }
  0x10   : > { %s705_s19 = scalar_select %p575_p9, 1, 0 }
  0x11   : > { %p582_p11 = por %p83_p10, %p51_p3  ;;  %s103_s22 = sand.u32 1, %s497_s8  }
  0x12   : > { %s313_s23 = sshll.u32 %s103_s22, 3  ;;  %s324_s24 = sshll.u32 %s505_s10, 7 }
  0x13   : > { %s706_s21 = scalar_select %p582_p11, 1, 0 }
  0x14   : > { %s593_s27 = scalar_lea.hbm %s700_s0, %s324_s24  ;;  %s107_s28 = scalar_lea.vmem [#allocation3], %s313_s23 }
  0x15   : > { %s117_s29 = sshll.u32 %s107_s28, 4  ;;  %p599_p0 = pnand %p338_p13, %p565_p4  ;;  %s595_s29 = int_to_ptr.vmem [resolvable:$true] %s117_s29 }
  0x16   : > { %s104_s2 = scalar_lea.sflag [#allocation4], %s103_s22  ;;  %s397_s3 = scalar_lea.hbm %s593_s27, 128 }
  0x17   : > { %p398_p3 = scmp.ne.s32.totalorder %s593_s27, %s397_s3  ;;  %p399_p5 = pneg %p599_p0 }
  0x18   : > { %s402_s12 = scalar_lea.hbm %s700_s0, 256  ;;  %p403_p4 = scmp.lt.u32.totalorder %s593_s27, %s700_s0 }
  0x19   : > { %p400_p6 = pnand %p399_p5, %p398_p3  ;;  %p404_p10 = scmp.lt.u32.totalorder %s402_s12, %s397_s3 }
  0x1a   : > { %p406_p12 = scmp.lt.u32.totalorder %s397_s3, %s593_s27 }
  0x1b   : > { %p401_p7 = pneg %p400_p6  ;;  %p405_p13 = por %p404_p10, %p403_p4 }
  0x1d   : > { %p407_p1 = por %p406_p12, %p405_p13 }
  0x1f   : > { %p408_p2 = pnand %p407_p1, %p401_p7 }
  0x21   : > { %411 = shalt.err (!%p408_p2)
}
  0x22   : > { %s412_s16 = scalar_lea.vmem %s595_s29, 128  ;;  %s511_s17 = smov [#allocation3]  }
  0x23   : > { %p413_p3 = scmp.ne.s32.totalorder %s595_s29, %s412_s16  ;;  %s417_s22 = sshll.u32 %s511_s17, 4  ;;  %s418_s22 = int_to_ptr.vmem [resolvable:$false] %s417_s22 }
  0x24   : > { %s419_s23 = scalar_lea.vmem %s418_s22, 256  ;;  %p420_p9 = scmp.lt.s32.totalorder %s595_s29, %s418_s22 }
  0x25   : > { %p415_p6 = pnand %p413_p3, %p399_p5  ;;  %p421_p4 = scmp.lt.s32.totalorder %s419_s23, %s412_s16 }
  0x27   : > { %p416_p11 = pneg %p415_p6  ;;  %p422_p10 = por %p421_p4, %p420_p9 }
  0x29   : > { %p423_p12 = pnand %p422_p10, %p416_p11 }
  0x2b   : > { %426 = shalt.err (!%p423_p12)
}
  0x2c   : > { %333 = dma.hbm_to_vmem [thread:$0]  (!%p599_p0), %s593_s27, 128, %s595_s29, %s104_s2  }
  0x2d   : > { %p708_p1 = scmp.lt.s32.totalorder %s509_s11, 3  ;;  %p709_p2 = scmp.ge.s32.totalorder %s509_s11, 1 }
  0x2f   : > { %p123_p5 = pnand %p709_p2, %p708_p1 }
  0x30   : > { %s635_s24 = sand.u32 (!%p123_p5), 1, %s493_s7  }
  0x31   : > { %126 = sbr.rel (%p123_p5) target bundleno = 130 (0x82), region = 24  ;;  %s317_s25 = sshll.u32 (!%p123_p5), %s635_s24, 3 }
  0x32   : > { %s129_s26 = scalar_lea.sflag (!%p123_p5), [#allocation4], %s635_s24  ;;  %s132_s28 = scalar_lea.vmem (!%p123_p5), [#allocation3], %s317_s25 }
  0x38   : > { %480 = dma.done.wait (%p571_p8), %s129_s26, 128  }
  0x39   : > { %482 = vsyncadd (%p571_p8), %s129_s26, 4294967168  ;;  %v512_v0 = vmov 0.0   ;;  %v153_v1 = vld [vmem:[%s132_s28] sm:$0xff]  ;;  %s150_s18 = scalar_lea.vmem [#allocation6], %s317_s25  ;;  %s325_s29 = sshll.u32 %s501_s9, 7 }
  0x3a   : > { %155 = vst [vmem:[#allocation2] sm:$0xf0] %v512_v0  ;;  %156 = vst [vmem:[#allocation2 + $0x8] sm:$0xf0] %v512_v0  ;;  %v154_v2 = vmul.f32 %v153_v1, %v153_v1  ;;  %s225_s27 = sshll.u32 %s150_s18, 4  ;;  %s653_s3 = scalar_lea.hbm %s701_s1, %s325_s29  ;;  %s648_s27 = int_to_ptr.vmem [resolvable:$true] %s225_s27 }
  0x3b   : > { %s209_s4 = scalar_lea.sflag [#allocation5], %s635_s24  ;;  %s427_s5 = scalar_lea.vmem %s648_s27, 128 }
  0x3c   : > { %160 = vst [vmem:[#allocation2] sm:$0xf] %v154_v2  ;;  %v158_v3 = vcombine.high %v154_v2, %v154_v2  ;;  %p428_p8 = scmp.ne.s32.totalorder %s648_s27, %s427_s5  ;;  %p710_p9 = scmp.ne.s32.totalorder %s705_s19, 0 }
  0x3d   : > { %s513_s9 = smov [#allocation6]  }
  0x3e   : > { %161 = vst [vmem:[#allocation2 + $0x8] sm:$0xf] %v158_v3  ;;  %p429_p11 = pnand %p428_p8, %p710_p9  ;;  %s431_s12 = sshll.u32 %s513_s9, 4  ;;  %s432_s12 = int_to_ptr.vmem [resolvable:$false] %s431_s12 }
  0x3f   : > { %s433_s13 = scalar_lea.vmem %s432_s12, 256  ;;  %p434_p7 = scmp.lt.s32.totalorder %s648_s27, %s432_s12 }
  0x40   : > { %p430_p0 = pneg %p429_p11  ;;  %p435_p13 = scmp.lt.s32.totalorder %s433_s13, %s427_s5 }
  0x42   : > { %p436_p3 = por %p435_p13, %p434_p7 }
  0x43   : > { %v162_v4 = vld [vmem:[#allocation2] sm:$0xff] }
  0x44   : > { %v164_v5 = vrot.slane %v162_v4, 7  ;;  %v168_v6 = vrot.slane %v162_v4, 1  ;;  %v172_v11 = vrot.slane %v162_v4, 6  ;;  %v176_v15 = vrot.slane %v162_v4, 2  ;;  %p437_p6 = pnand %p436_p3, %p430_p0 }
  0x45   : > { %v163_v7 = vld [vmem:[#allocation2 + $0x8] sm:$0xff] }
  0x46   : > { %v166_v8 = vadd.f32 %v164_v5, %v162_v4  ;;  %v165_v9 = vrot.slane %v163_v7, 7  ;;  %v169_v13 = vrot.slane %v163_v7, 1  ;;  %v173_v17 = vrot.slane %v163_v7, 6 }
  0x47   : > { %v177_v20 = vrot.slane %v163_v7, 2 }
  0x48   : > { %v170_v10 = vadd.f32 %v168_v6, %v166_v8  ;;  %v167_v12 = vadd.f32 %v165_v9, %v163_v7 }
  0x4a   : > { %v174_v14 = vadd.f32 %v172_v11, %v170_v10  ;;  %v171_v16 = vadd.f32 %v169_v13, %v167_v12 }
  0x4c   : > { %v178_v18 = vadd.f32 %v176_v15, %v174_v14  ;;  %v175_v19 = vadd.f32 %v173_v17, %v171_v16 }
  0x4e   : > { %v180_v21 = vmul.f32 0.2, %v178_v18  ;;  %v179_v22 = vadd.f32 %v177_v20, %v175_v19 }
  0x50   : > { %v182_v23 = vadd.f32 1.0, %v180_v21  ;;  %v181_v24 = vmul.f32 0.2, %v179_v22 }
  0x52   : > { %v183_v25 = vadd.f32 1.0, %v181_v24  ;;  %389 = vrsqrt.f32 %v182_v23  ;;  %vm186_vm0 = vcmp.eq.f32.partialorder %v182_v23, inf  ;;  %v189_v29 = vand.u32 2147483648, %v182_v23 }
  0x53   : > { %vm188_vm1 = vcmp.eq.f32.partialorder %v182_v23, 0.0 }
  0x54   : > { %391 = vrsqrt.f32 %v183_v25  ;;  %vm193_vm2 = vcmp.eq.f32.partialorder %v183_v25, inf  ;;  %v196_v33 = vand.u32 2147483648, %v183_v25  ;;  %vm195_vm3 = vcmp.eq.f32.partialorder %v183_v25, 0.0 }
  0x5c   : > { %v390_v26 = vpop.eup %389 }
  0x5d   : > { %v185_v27 = vmul.f32 %v390_v26, %v182_v23 }
  0x5e   : > { %v392_v28 = vpop.eup %391 }
  0x5f   : > { %v187_v30 = vsel %vm186_vm0, %v182_v23, %v185_v27  ;;  %v192_v31 = vmul.f32 %v392_v28, %v183_v25 }
  0x60   : > { %v190_v32 = vsel %vm188_vm1, %v189_v29, %v187_v30 }
  0x61   : > { %v194_v34 = vsel %vm193_vm2, %v183_v25, %v192_v31  ;;  %v198_v35 = vmul.f32 %v190_v32, %v182_v23 }
  0x62   : > { %v197_v36 = vsel %vm195_vm3, %v196_v33, %v194_v34 }
  0x63   : > { %v199_v37 = vmul.f32 %v197_v36, %v183_v25  ;;  %393 = vrsqrt.f32 %v198_v35 }
  0x65   : > { %395 = vrsqrt.f32 %v199_v37 }
  0x6d   : > { %v394_v38 = vpop.eup %393 }
  0x6f   : > { %v396_v39 = vpop.eup %395 }
  0x70   : > { %v204_v40 = vcombine.low %v394_v38, %v396_v39 }
  0x72   : > { %v206_v41 = vmul.f32 %v204_v40, %v153_v1 }
  0x74   : > { %207 = vst [vmem:[%s150_s18] sm:$0xff] %v206_v41 }
  0x75   : > { %440 = shalt.err (!%p437_p6)
}
  0x76   : > { %s441_s15 = scalar_lea.hbm %s653_s3, 128  ;;  %s445_s22 = scalar_lea.hbm %s701_s1, 256 }
  0x77   : > { %p442_p4 = scmp.ne.s32.totalorder %s653_s3, %s441_s15  ;;  %p446_p1 = scmp.lt.u32.totalorder %s653_s3, %s701_s1 }
  0x78   : > { %p447_p2 = scmp.lt.u32.totalorder %s445_s22, %s441_s15  ;;  %p449_p8 = scmp.lt.u32.totalorder %s441_s15, %s653_s3 }
  0x79   : > { %p443_p10 = pnand %p442_p4, %p710_p9 }
  0x7a   : > { %p448_p5 = por %p447_p2, %p446_p1 }
  0x7b   : > { %p444_p12 = pneg %p443_p10 }
  0x7c   : > { %p450_p11 = por %p449_p8, %p448_p5 }
  0x7e   : > { %p451_p0 = pnand %p450_p11, %p444_p12 }
  0x80   : > { %454 = shalt.err (!%p451_p0)
}
  0x81   : > { %328 = dma.vmem_to_hbm [thread:$0]  (%p710_p9), %s648_s27, 128, %s653_s3, %s209_s4  }
  0x82 PF: > { %s237_s25 = sand.u32 1, %s489_s6   ;;  %p711_p7 = scmp.ne.s32.totalorder %s706_s21, 0 }
  0x83   : > { %p712_p13 = scmp.ge.s32.totalorder %s509_s11, 2  ;;  %s238_s26 = scalar_lea.sflag [#allocation5], %s237_s25 }
  0x85   : > { %p335_p3 = pnand %p712_p13, %p711_p7 }
  0x87   : > { %484 = dma.done.wait (!%p335_p3), %s238_s26, 128  }
  0x88   : > { %486 = vsyncadd (!%p335_p3), %s238_s26, 4294967168  ;;  %s17_s11 = sadd.s32 1, %s509_s11   ;;  %s713_s6 = smov %s493_s7 }
  0x89   : > { %p14_p6 = scmp.ge.s32.totalorder %s17_s11, 4   ;;  %s714_s7 = smov %s497_s8 }
  0x8a   : > { %s715_s8 = smov %s580_s20  ;;  %s716_s9 = smov %s505_s10 }
  0x8b   : > { %s717_s10 = smov %s719_s14  ;;  %16 = sbr.rel (!%p14_p6) target bundleno = 6 (0x6), region = 69 }
  0x92   :  { %243 = vsyncpa [#allocation4], 1 }
  0x93   :  { %245 = vsyncpa [#allocation4 + $0x1], 1 }
  0x94   :  { %246 = vsyncpa [#allocation5], 1 }
  0x95   :  { %248 = vsyncpa [#allocation5 + $0x1], 1 }

</bundles_post_ra>
